<compile_context>
chip_gen: v7x
topology: tpu7x:2x2x1
jax: 0.10.0
libtpu: 0.0.40
codegen_flags: <defaults>
</compile_context>

<pallas_src>
import numpy as np
import jax
import jax.numpy as jnp
from jax.experimental import pallas as pl
from jax.experimental.pallas import tpu as pltpu


def get_position_encoding(seq_len, d, n=10000.0):
    """Standard sinusoidal positional encoding, (seq_len, d)."""
    k = np.arange(seq_len, dtype=np.float64)[:, None]
    i = np.arange(d // 2, dtype=np.float64)[None, :]
    denom = np.power(n, 2.0 * i / d)
    pe = np.zeros((seq_len, d), dtype=np.float64)
    pe[:, 0::2] = np.sin(k / denom)
    pe[:, 1::2] = np.cos(k / denom)
    return pe


def simple_attn_kernel(x_ref, vm_ref, w_ref, pos_ref, bf_ref, o_ref):
    TBV = x_ref.shape[0]                # TB * V (flattened, sublane-dense)
    V, F = pos_ref.shape                # F = 2*Kp + 128, Kp a multiple of 128
    TB = TBV // V
    Kp = (F - 128) // 2

    # --- one fused MXU matmul: key | query | (embed @ wf); bf16 in, f32 accumulate ---
    h = jnp.dot(x_ref[...], w_ref[...], preferred_element_type=jnp.float32)   # (TB*V, F)
    # Add the precomputed positional-encoding projection + biases (per visit).
    # V is a multiple of 8, so this sublane split is layout-preserving (no relayout).
    h = h.reshape(TB, V, F) + pos_ref[...][None, :, :]

    # Lane-aligned (free) slices of the fused result.
    xk = jnp.maximum(h[:, :, :Kp], 0.0)          # relu(fc_key(x))
    xq = jnp.maximum(h[:, :, Kp:2 * Kp], 0.0)    # relu(fc_query(x))
    xe = h[:, :, 2 * Kp:]                        # fc_embed(x) @ wf in lane 0, zeros elsewhere

    # --- visit mask ({0,1} floats, precomputed in the wrapper) ---
    vmf = vm_ref[...]                                         # (TB, V)
    valid = vmf > 0.0
    n_valid = jnp.sum(vmf, axis=-1, keepdims=True)            # (TB, 1)
    inv_n = pl.reciprocal(jnp.maximum(n_valid, 1.0), approx=True)   # EUP; guard empty rows

    # --- masked mean query over visits ---
    mean_q = jnp.sum(xq * vmf[:, :, None], axis=1) * inv_n    # (TB, Kp)

    # --- per-visit score = <key_v, mean_query>, mask + softmax over visits ---
    score = jnp.sum(xk * mean_q[:, None, :], axis=-1)         # (TB, V)
    score = jnp.where(valid, score, jnp.float32(-1000000000.0))
    score = score - jnp.max(score, axis=-1, keepdims=True)
    p = jnp.exp(score)
    attn = p * pl.reciprocal(jnp.sum(p, axis=-1, keepdims=True), approx=True)   # (TB, V)

    # --- attention-weighted sum; the fc layer is folded into xe's lane 0, so lane 0 of
    #     the visit-reduced group IS the pre-bias logit (remaining lanes are exactly 0) ---
    wsum = jnp.sum(xe * attn[:, :, None], axis=1)             # (TB, 128)
    logit = wsum[:, 0:1]                                      # (TB, 1)
    o_ref[...] = jax.nn.sigmoid(logit + bf_ref[0, 0])


def simple_attn_forward(x, masks, params, *, block_b=256, window_size=64,
                        vmem_limit_bytes=48 * 1024 * 1024):
    # Window truncation (module semantics).
    if x.shape[1] > window_size:
        x = x[:, :window_size]
        masks = masks[:, :window_size]
    B, V, D = x.shape
    K = params["wk"].shape[1]
    hi = jax.lax.Precision.HIGHEST

    # Visit-level validity (B, V): never ship the full (B, V, D) masks into the kernel.
    vm = (jnp.sum(masks, axis=-1) > 0).astype(jnp.float32)

    wk, wq, we, wf = params["wk"], params["wq"], params["we"], params["wf"]

    # Fold the final scoring layer into the embed projection (both linear => exact).
    we_f = jnp.dot(we, wf.T, precision=hi)                       # (D+P, 1)
    be_f = jnp.dot(params["be"], wf.T, precision=hi)             # (1, 1)

    # Fuse key | query | folded-embed; zero-pad each segment to a 128-lane boundary so the
    # in-kernel slices are tile-aligned views.
    Kp = pl.cdiv(K, 128) * 128
    F = 2 * Kp + 128

    def pad_cols(w, width):
        return jnp.pad(w, ((0, 0), (0, width - w.shape[1])))

    w_all = jnp.concatenate(
        [pad_cols(wk, Kp), pad_cols(wq, Kp), pad_cols(we_f, 128)], axis=1)     # (D+P, F)
    b_all = jnp.concatenate(
        [pad_cols(params["bk"], Kp), pad_cols(params["bq"], Kp),
         pad_cols(be_f, 128)], axis=1)                                         # (1, F)

    # Fold the positional-encoding rows + biases into a per-visit additive term (f32).
    w_x = w_all[:D]                                              # (D, F)  hot matmul weight
    w_p = w_all[D:]                                              # (P, F)
    pos = params["pos_enc"][:V].astype(jnp.float32)              # (V, P)
    pos_proj = (jnp.dot(pos, w_p, precision=hi) + b_all).astype(jnp.float32)   # (V, F)

    # Pad visits to a sublane multiple so the in-kernel sublane split is layout-preserving;
    # padded visits carry zero x / mask / pos rows (masked out of every reduction).
    V_pad = pl.cdiv(V, 8) * 8
    if V_pad != V:
        x = jnp.pad(x, ((0, 0), (0, V_pad - V), (0, 0)))
        vm = jnp.pad(vm, ((0, 0), (0, V_pad - V)))
        pos_proj = jnp.pad(pos_proj, ((0, V_pad - V), (0, 0)))

    # Batch tile: multiple of 8; keep >= 2 grid steps when possible so the "parallel"
    # batch axis can shard across v7x's two TensorCores.  Size block_b per generation
    # (v7x has 64 MiB VMEM/TC vs 128 MiB on v5e/v6e).
    TB = max(8, (int(block_b) // 8) * 8)
    TB = min(TB, pl.cdiv(B, 8) * 8)
    if TB >= 16 and pl.cdiv(B, TB) < 2:
        TB = ((TB // 2 + 7) // 8) * 8
    B_pad = pl.cdiv(B, TB) * TB
    G = B_pad // TB
    if B_pad != B:
        x = jnp.pad(x, ((0, B_pad - B), (0, 0), (0, 0)))
        vm = jnp.pad(vm, ((0, B_pad - B), (0, 0)))

    # bf16 matmul inputs: x is multi-hot {0,1} so the cast is exact.  Flatten to (B*V, D)
    # so the x block is sublane-dense and needs no in-kernel reshape/relayout.
    x_flat = x.astype(jnp.bfloat16).reshape(B_pad * V_pad, D)
    w_bf = w_x.astype(jnp.bfloat16)

    # NOTE: if production input_dim D grows into the thousands, add an inner "arbitrary"
    # grid axis over D with a VMEM f32 accumulator instead of shrinking TB.

    out = pl.pallas_call(
        simple_attn_kernel,
        out_shape=jax.ShapeDtypeStruct((B_pad, 1), jnp.float32),
        grid=(G,),
        in_specs=[
            pl.BlockSpec((TB * V_pad, D), lambda i: (i, 0)),     # flattened x tile (bf16)
            pl.BlockSpec((TB, V_pad), lambda i: (i, 0)),         # visit-validity mask tile
            pl.BlockSpec((D, F), lambda i: (0, 0)),              # fused projection weight
            pl.BlockSpec((V_pad, F), lambda i: (0, 0)),          # pos-enc proj + biases
            pl.BlockSpec(memory_space=pltpu.MemorySpace.SMEM),   # final bias scalar
        ],
        out_specs=pl.BlockSpec((TB, 1), lambda i: (i, 0)),
        compiler_params=pltpu.CompilerParams(
            dimension_semantics=("parallel",),
            vmem_limit_bytes=vmem_limit_bytes,
        ),
    )(x_flat, vm, w_bf, pos_proj, params["bf"])

    return out.reshape(B_pad)[:B]


def ref_forward(x, masks, params, window_size=64):
    """Pure-JAX mirror of the PyTorch SimpleAttn.forward (f32, HIGHEST precision)."""
    hi = jax.lax.Precision.HIGHEST
    if x.shape[1] > window_size:
        x = x[:, :window_size]
        masks = masks[:, :window_size]
    B, V, _ = x.shape
    pos = params["pos_enc"][:V]
    xcat = jnp.concatenate(
        [x, jnp.broadcast_to(pos[None], (B, V, pos.shape[-1]))], axis=-1)
    xk = jax.nn.relu(jnp.dot(xcat, params["wk"], precision=hi) + params["bk"])
    xq = jax.nn.relu(jnp.dot(xcat, params["wq"], precision=hi) + params["bq"])
    xe = jnp.dot(xcat, params["we"], precision=hi) + params["be"]
    vm = jnp.sum(masks, -1) > 0
    vmf = vm.astype(jnp.float32)
    mean_q = jnp.sum(xq * vmf[..., None], axis=1) / jnp.sum(vmf, -1, keepdims=True)
    score = jnp.sum(xk * mean_q[:, None, :], axis=-1)
    score = jnp.where(vm, score, -1000000000.0)
    attn = jax.nn.softmax(score, axis=-1)
    out = jnp.sum(xe * attn[..., None], axis=1)
    logit = jnp.sum(out * params["wf"], axis=-1, keepdims=True) + params["bf"]
    return jax.nn.sigmoid(logit)[:, 0]


if __name__ == "__main__":
    # Small shapes consistent with the module: x, masks: (B, V, D)
    B, V = 16, 8            # batch, visits  (block_b=8 below -> 2 grid steps, pipelined)
    D = 32                  # input_dim (# diagnosis codes)
    P = 8                   # pos_enc_dim
    K, E = 32, 16           # key_dim, embedding_dim

    key = jax.random.PRNGKey(0)
    kx, km, k1, k2, k3, k4, k5, k6, k7, k8 = jax.random.split(key, 10)

    # Multi-hot input and padding masks: visit v is valid iff v < length[b].
    lengths = jax.random.randint(km, (B,), 1, V + 1)
    valid = (jnp.arange(V)[None, :] < lengths[:, None]).astype(jnp.float32)   # (B, V)
    x = jax.random.bernoulli(kx, 0.3, (B, V, D)).astype(jnp.float32) * valid[:, :, None]
    masks = jnp.ones((B, V, D), jnp.float32) * valid[:, :, None]

    # Deterministic parameter init; Linear weights stored as (in_features, out_features).
    def init(rng, shape, fan_in):
        return jax.random.normal(rng, shape, jnp.float32) / jnp.sqrt(fan_in)

    params = {
        "wk": init(k1, (D + P, K), D + P), "bk": init(k2, (1, K), D + P),
        "wq": init(k3, (D + P, K), D + P), "bq": init(k4, (1, K), D + P),
        "we": init(k5, (D + P, E), D + P), "be": init(k6, (1, E), D + P),
        "wf": init(k7, (1, E), E), "bf": init(k8, (1, 1), E),
        "pos_enc": jnp.asarray(get_position_encoding(350, P), jnp.float32),
    }

    y = jax.block_until_ready(simple_attn_forward(x, masks, params, block_b=8))
    y_ref = jax.block_until_ready(ref_forward(x, masks, params))

    assert y.shape == (B,), f"bad output shape {y.shape}"
    # bf16-MXU-class accuracy vs the f32 HIGHEST-precision module reference.
    assert jnp.allclose(y, y_ref, rtol=5e-3, atol=5e-3), f"mismatch:\n{y}\n{y_ref}"
    print("KERNEL_OK")
</pallas_src>

<mosaic_0001>
module attributes {stable_mosaic.version = 11 : i64} {
  func.func @simple_attn_kernel(%arg0: i32, %arg1: memref<64x32xbf16, #tpu.memory_space<vmem>>, %arg2: memref<8x8xf32, #tpu.memory_space<vmem>>, %arg3: memref<32x384xbf16, #tpu.memory_space<vmem>>, %arg4: memref<8x384xf32, #tpu.memory_space<vmem>>, %arg5: memref<1x1xf32, #tpu.memory_space<smem>>, %arg6: memref<8x1xf32, #tpu.memory_space<vmem>>) attributes {dimension_semantics = [#tpu.dimension_semantics<parallel>], iteration_bounds = array<i64: 2>, scalar_prefetch = 0 : i64, scratch_operands = 0 : i64, tpu.core_type = #tpu.core_type<tc>, window_params = [{transform_indices = @transform_0, window_bounds = array<i64: 64, 32>}, {transform_indices = @transform_1, window_bounds = array<i64: 8, 8>}, {pipeline_mode = #tpu.pipeline_mode<synchronous>, transform_indices = @transform_2, window_bounds = array<i64: 32, 384>}, {pipeline_mode = #tpu.pipeline_mode<synchronous>, transform_indices = @transform_3, window_bounds = array<i64: 8, 384>}, {transform_indices = @transform_4, window_bounds = array<i64: 1, 1>}, {transform_indices = @transform_5, window_bounds = array<i64: 8, 1>}]} {
    %c0 = arith.constant 0 : index
    %c0_0 = arith.constant 0 : index
    %0 = vector.load %arg1[%c0, %c0_0] : memref<64x32xbf16, #tpu.memory_space<vmem>>, vector<64x32xbf16>
    %c0_1 = arith.constant 0 : index
    %c0_2 = arith.constant 0 : index
    %1 = vector.load %arg3[%c0_1, %c0_2] : memref<32x384xbf16, #tpu.memory_space<vmem>>, vector<32x384xbf16>
    %cst = arith.constant dense<0.000000e+00> : vector<64x384xf32>
    %2 = tpu.matmul %0, %1, %cst {dimension_numbers = #tpu.dot_dimension_numbers<[1], [0], [0], [1], [0, 0, 1, 1], [], []>} : vector<64x32xbf16>, vector<32x384xbf16>, vector<64x384xf32> -> vector<64x384xf32>
    %3 = vector.shape_cast %2 : vector<64x384xf32> to vector<8x8x384xf32>
    %c0_3 = arith.constant 0 : index
    %c0_4 = arith.constant 0 : index
    %4 = vector.load %arg4[%c0_3, %c0_4] : memref<8x384xf32, #tpu.memory_space<vmem>>, vector<8x384xf32>
    %5 = vector.shape_cast %4 : vector<8x384xf32> to vector<1x8x384xf32>
    %6 = vector.broadcast %5 : vector<1x8x384xf32> to vector<8x8x384xf32>
    %7 = arith.addf %3, %6 : vector<8x8x384xf32>
    %8 = vector.extract_strided_slice %7 {offsets = [0, 0, 0], sizes = [8, 8, 128], strides = [1, 1, 1]} : vector<8x8x384xf32> to vector<8x8x128xf32>
    %cst_5 = arith.constant 0.000000e+00 : f32
    %9 = vector.broadcast %cst_5 : f32 to vector<8x8x128xf32>
    %10 = arith.maximumf %8, %9 : vector<8x8x128xf32>
    %11 = vector.extract_strided_slice %7 {offsets = [0, 0, 128], sizes = [8, 8, 128], strides = [1, 1, 1]} : vector<8x8x384xf32> to vector<8x8x128xf32>
    %cst_6 = arith.constant 0.000000e+00 : f32
    %12 = vector.broadcast %cst_6 : f32 to vector<8x8x128xf32>
    %13 = arith.maximumf %11, %12 : vector<8x8x128xf32>
    %14 = vector.extract_strided_slice %7 {offsets = [0, 0, 256], sizes = [8, 8, 128], strides = [1, 1, 1]} : vector<8x8x384xf32> to vector<8x8x128xf32>
    %c0_7 = arith.constant 0 : index
    %c0_8 = arith.constant 0 : index
    %15 = vector.load %arg2[%c0_7, %c0_8] : memref<8x8xf32, #tpu.memory_space<vmem>>, vector<8x8xf32>
    %cst_9 = arith.constant 0.000000e+00 : f32
    %16 = vector.broadcast %cst_9 : f32 to vector<8x8xf32>
    %17 = arith.cmpf ogt, %15, %16 : vector<8x8xf32>
    %cst_10 = arith.constant dense<0.000000e+00> : vector<8xf32>
    %18 = vector.multi_reduction <add>, %15, %cst_10 [1] : vector<8x8xf32> to vector<8xf32>
    %19 = vector.shape_cast %18 : vector<8xf32> to vector<8x1xf32>
    %cst_11 = arith.constant 1.000000e+00 : f32
    %20 = vector.broadcast %cst_11 : f32 to vector<8x1xf32>
    %21 = arith.maximumf %19, %20 : vector<8x1xf32>
    %22 = tpu.reciprocal %21 {approx = true} : vector<8x1xf32> -> vector<8x1xf32>
    %23 = vector.shape_cast %15 : vector<8x8xf32> to vector<8x8x1xf32>
    %24 = vector.broadcast %23 : vector<8x8x1xf32> to vector<8x8x128xf32>
    %25 = arith.mulf %13, %24 : vector<8x8x128xf32>
    %cst_12 = arith.constant dense<0.000000e+00> : vector<8x128xf32>
    %26 = vector.multi_reduction <add>, %25, %cst_12 [1] : vector<8x8x128xf32> to vector<8x128xf32>
    %27 = vector.broadcast %22 : vector<8x1xf32> to vector<8x128xf32>
    %28 = arith.mulf %26, %27 : vector<8x128xf32>
    %29 = vector.shape_cast %28 : vector<8x128xf32> to vector<8x1x128xf32>
    %30 = vector.broadcast %29 : vector<8x1x128xf32> to vector<8x8x128xf32>
    %31 = arith.mulf %10, %30 : vector<8x8x128xf32>
    %cst_13 = arith.constant dense<0.000000e+00> : vector<8x8xf32>
    %32 = vector.multi_reduction <add>, %31, %cst_13 [2] : vector<8x8x128xf32> to vector<8x8xf32>
    %cst_14 = arith.constant -1.000000e+09 : f32
    %33 = vector.broadcast %cst_14 : f32 to vector<8x8xf32>
    %34 = arith.select %17, %32, %33 : vector<8x8xi1>, vector<8x8xf32>
    %cst_15 = arith.constant dense<0xFF800000> : vector<8xf32>
    %35 = vector.multi_reduction <maximumf>, %34, %cst_15 [1] : vector<8x8xf32> to vector<8xf32>
    %36 = vector.shape_cast %35 : vector<8xf32> to vector<8x1xf32>
    %37 = vector.broadcast %36 : vector<8x1xf32> to vector<8x8xf32>
    %38 = arith.subf %34, %37 : vector<8x8xf32>
    %39 = math.exp %38 : vector<8x8xf32>
    %cst_16 = arith.constant dense<0.000000e+00> : vector<8xf32>
    %40 = vector.multi_reduction <add>, %39, %cst_16 [1] : vector<8x8xf32> to vector<8xf32>
    %41 = vector.shape_cast %40 : vector<8xf32> to vector<8x1xf32>
    %42 = tpu.reciprocal %41 {approx = true} : vector<8x1xf32> -> vector<8x1xf32>
    %43 = vector.broadcast %42 : vector<8x1xf32> to vector<8x8xf32>
    %44 = arith.mulf %39, %43 : vector<8x8xf32>
    %45 = vector.shape_cast %44 : vector<8x8xf32> to vector<8x8x1xf32>
    %46 = vector.broadcast %45 : vector<8x8x1xf32> to vector<8x8x128xf32>
    %47 = arith.mulf %14, %46 : vector<8x8x128xf32>
    %cst_17 = arith.constant dense<0.000000e+00> : vector<8x128xf32>
    %48 = vector.multi_reduction <add>, %47, %cst_17 [1] : vector<8x8x128xf32> to vector<8x128xf32>
    %49 = vector.extract_strided_slice %48 {offsets = [0, 0], sizes = [8, 1], strides = [1, 1]} : vector<8x128xf32> to vector<8x1xf32>
    %c0_18 = arith.constant 0 : index
    %c0_19 = arith.constant 0 : index
    %50 = memref.load %arg5[%c0_18, %c0_19] : memref<1x1xf32, #tpu.memory_space<smem>>
    %51 = vector.broadcast %50 : f32 to vector<8x1xf32>
    %52 = arith.addf %49, %51 : vector<8x1xf32>
    %53 = arith.negf %52 : vector<8x1xf32>
    %54 = math.exp %53 : vector<8x1xf32>
    %cst_20 = arith.constant 1.000000e+00 : f32
    %55 = vector.broadcast %cst_20 : f32 to vector<8x1xf32>
    %56 = arith.addf %55, %54 : vector<8x1xf32>
    %57 = arith.divf %55, %56 : vector<8x1xf32>
    %c0_21 = arith.constant 0 : index
    %c0_22 = arith.constant 0 : index
    %58 = vector.load %arg6[%c0_21, %c0_22] : memref<8x1xf32, #tpu.memory_space<vmem>>, vector<8x1xf32>
    tpu.vector_store %arg6[%c0_21, %c0_22], %57 {strides = array<i32>} : memref<8x1xf32, #tpu.memory_space<vmem>>, vector<8x1xf32>,
    return
  }
  func.func @transform_0(%arg0: i32) -> (i32, i32) {
    %c0_i32 = arith.constant 0 : i32
    %c0_i32_0 = arith.constant 0 : i32
    return %arg0, %c0_i32 : i32, i32
  }
  func.func @transform_1(%arg0: i32) -> (i32, i32) {
    %c0_i32 = arith.constant 0 : i32
    %c0_i32_0 = arith.constant 0 : i32
    return %arg0, %c0_i32 : i32, i32
  }
  func.func @transform_2(%arg0: i32) -> (i32, i32) {
    %c0_i32 = arith.constant 0 : i32
    %c0_i32_0 = arith.constant 0 : i32
    %c0_i32_1 = arith.constant 0 : i32
    return %c0_i32, %c0_i32_0 : i32, i32
  }
  func.func @transform_3(%arg0: i32) -> (i32, i32) {
    %c0_i32 = arith.constant 0 : i32
    %c0_i32_0 = arith.constant 0 : i32
    %c0_i32_1 = arith.constant 0 : i32
    return %c0_i32, %c0_i32_0 : i32, i32
  }
  func.func @transform_4(%arg0: i32) -> (i32, i32) {
    %c0_i32 = arith.constant 0 : i32
    %c0_i32_0 = arith.constant 0 : i32
    %c0_i32_1 = arith.constant 0 : i32
    return %c0_i32, %c0_i32_0 : i32, i32
  }
  func.func @transform_5(%arg0: i32) -> (i32, i32) {
    %c0_i32 = arith.constant 0 : i32
    %c0_i32_0 = arith.constant 0 : i32
    return %arg0, %c0_i32 : i32, i32
  }
}

</mosaic_0001>

<bundles_post_ra>
// kernel: tpu_custom_call.1
= control target key start
LH: loop header
LB: loop body
LE: loop exit
PB: predicated region body
PF: predicated region fallthrough
CT: control target
= control target key end

     0   :  { %s1188_s20 = smov 0   ;;  %s1410_s0 = inlined_call_operand.vmem [shape: bf16[128,32], index: 0, kind: input, shape index: {}]   ;;  %s1411_s1 = inlined_call_operand.vmem [shape: f32[16,8], index: 1, kind: input, shape index: {}]   ;;  %s1412_s2 = inlined_call_operand.vmem [shape: bf16[32,384], index: 2, kind: input, shape index: {}]   ;;  %s1413_s3 = inlined_call_operand.vmem [shape: f32[8,384], index: 3, kind: input, shape index: {}]   ;;  %s1414_s4 = inlined_call_operand.<no memory space> [shape: f32[1,1], index: 4, kind: input, shape index: {}]   ;;  %s1415_s5 = inlined_call_operand.vmem [shape: f32[16,1], index: 5, kind: output, shape index: {}]  }
   0x1   :  { %10 = sst [smem:[#allocation2]] %s1414_s4 }
   0x2 LB: > { %s1028_s21 = sadd.s32 4294967295, %s1152_s20   ;;  %p1032_p0 = scmp.ge.s32.totalorder %s1152_s20, 1  ;;  %s1152_s20 = sphi %s1188_s20, %s16_s20  }
   0x3   : > { %p198_p1 = scmp.lt.s32.totalorder %s1152_s20, 3 }
   0x5   : > { %p199_p2 = pnand %p1032_p0, %p198_p1 }
   0x6   : > { %v1096_v0 = vld [vmem:[%s1412_s2 + $0x4] ss:$12 sps:$4 sm:$0xff] (!%p199_p2)   ;;  %s1033_s4 = sshll.u32 (!%p199_p2), %s1028_s21, 3  ;;  %v514_v1 = vlaneseq (!%p199_p2)  ;;  %v1098_v2 = vld [vmem:[%s1412_s2] ss:$12 sps:$4 sm:$0xff] (!%p199_p2)   ;;  %v1154_v3 = vmov (!%p199_p2), 0  }
   0x7   : > { %202 = sbr.rel (%p199_p2) target bundleno = 916 (0x394), region = 40  ;;  %357 = vmatprep.mubr.bf16.mxu0 (!%p199_p2), %v1154_v3  ;;  %387 = vmatprep.mubr.bf16.mxu1 (!%p199_p2), %v1154_v3  ;;  %p230_p3 = scmp.lt.s32.totalorder (!%p199_p2), %s1033_s4, 15  ;;  %v1099_v4 = vld [vmem:[%s1412_s2 + $0x1c] ss:$12 sps:$4 sm:$0xff] (!%p199_p2)   ;;  %v1101_v5 = vld [vmem:[%s1412_s2 + $0x18] ss:$12 sps:$4 sm:$0xff] (!%p199_p2)  }
   0x8   : > { %325 = vmatprep.subr.bf16.mxu0 (!%p199_p2), %v1096_v0  ;;  %1083 = vmatprep.subr.bf16.mxu1 (!%p199_p2), %v1096_v0  ;;  %p235_p4 = scmp.lt.s32.totalorder (!%p199_p2), %s1028_s21, 1  ;;  %v1211_v6 = vshrl.u32 (!%p199_p2), %v514_v1, 7  ;;  %vm312_vm0 = vcmask (!%p199_p2), 261120   ;;  %vm508_vm1 = vcmask (!%p199_p2), 64512   ;;  %v1282_v36 = vld [vmem:[%s1413_s3 + $0x8] sm:$0xff] (!%p199_p2)  ;;  %vm748_vm2 = vcmask (!%p199_p2), 1041409  }
   0x9   : > { %326 = vmatpush1.bf16.msra.mxu0 (!%p199_p2), %v1098_v2  ;;  %1085 = vmatpush1.bf16.msra.mxu1 (!%p199_p2), %v1098_v2  ;;  %v1295_v2 = vld [vmem:[%s1413_s3] sm:$0xff] (!%p199_p2)  ;;  %vm750_vm3 = vcmask (!%p199_p2), 1042434   ;;  %vm752_vm4 = vcmask (!%p199_p2), 1043459   ;;  %vm754_vm5 = vcmask (!%p199_p2), 1044484   ;;  %vm756_vm6 = vcmask (!%p199_p2), 1045509   ;;  %s887_s24 = sld [smem:[#allocation2]] (!%p199_p2) }
   0xa   : > { %327 = vmatprep.subr.bf16.mxu0 (!%p199_p2), %v1099_v4  ;;  %1084 = vmatprep.subr.bf16.mxu1 (!%p199_p2), %v1099_v4  ;;  %v523_v9 = vsub.s32 (!%p199_p2), 1, %v1211_v6  ;;  %v530_v10 = vsub.s32 (!%p199_p2), 2, %v1211_v6  ;;  %v537_v16 = vsub.s32 (!%p199_p2), 3, %v1211_v6  ;;  %v544_v18 = vsub.s32 (!%p199_p2), 4, %v1211_v6 }
   0xb   : > { %v551_v21 = vsub.s32 (!%p199_p2), 5, %v1211_v6  ;;  %v558_v23 = vsub.s32 (!%p199_p2), 6, %v1211_v6  ;;  %v1262_v24 = vsub.s32 (!%p199_p2), 0, %v1211_v6  ;;  %v565_v26 = vsub.s32 (!%p199_p2), 7, %v1211_v6 }
   0xc   : > { %vm758_vm7 = vcmask (!%p199_p2), 1046534   ;;  %vm760_vm8 = vcmask (!%p199_p2), 1047559   ;;  %vm961_vm10 = vcmask (!%p199_p2), 7168  }
   0xd   : > { %328 = vmatpush1.bf16.msra.mxu0 (!%p199_p2), %v1101_v5  ;;  %1086 = vmatpush1.bf16.msra.mxu1 (!%p199_p2), %v1101_v5 }
   0xe   : > { %s1417_s4 = smov (!%p230_p3, %s1033_s4), 15  ;;  %s1419_s21 = smov (!%p235_p4, %s1028_s21), 1 }
   0xf   : > { %s1034_s30 = sshll.u32 %s1417_s4, 2  ;;  %s1035_s9 = sshll.u32 %s1419_s21, 3 }
  0x10   : > { %s233_s8 = scalar_lea.vmem %s1410_s0, %s1034_s30  ;;  %s238_s12 = scalar_lea.vmem %s1411_s1, %s1035_s9 }
  0x11   : > { %v1102_v7 = vld [vmem:[%s233_s8] sm:$0xff]   ;;  %v1217_v8 = vld [vmem:[%s233_s8 + $0x18] sm:$0xff]   ;;  %v1237_v14 = vld [vmem:[%s233_s8 + $0x8] sm:$0xff]   ;;  %s242_s27 = scalar_lea.vmem %s1415_s5, %s1035_s9 }
  0x12   : > { %1047 = vmatmul.mubr.msk.bf16.vlgmr.msra.gmra.mrb[0].mxu0 %vm312_vm0, %v1102_v7  ;;  %1050 = vmatmul.mubr.msk.bf16.vlgmr.msra.gmra.mrb[0].mxu1 %vm312_vm0, %v1217_v8  ;;  %v1229_v11 = vld [vmem:[%s238_s12] sm:$0xff]  ;;  %v1249_v19 = vld [vmem:[%s233_s8 + $0x10] sm:$0xff]  }
  0x13   : > { %367 = vmatprep.mubr.bf16.mxu0 %v1154_v3  ;;  %1075 = vmatprep.mubr.msk.bf16.mxu1 %vm312_vm0, %v1102_v7  ;;  %v509_v12 = vsel %vm508_vm1, %v1229_v11, 0.0  ;;  %v524_v13 = vrot.slane %v1229_v11, %v523_v9  ;;  %v531_v15 = vrot.slane %v1229_v11, %v530_v10  ;;  %v538_v17 = vrot.slane %v1229_v11, %v537_v16 }
  0x14   : > { %510 = vadd.xlane.f32.xlu0 %v509_v12  ;;  %v545_v20 = vrot.slane %v1229_v11, %v544_v18  ;;  %v552_v22 = vrot.slane %v1229_v11, %v551_v21  ;;  %v559_v25 = vrot.slane %v1229_v11, %v558_v23  ;;  %v517_v27 = vrot.slane %v1229_v11, %v1262_v24 }
  0x15   : > { %526 = vbcast.lane.b32.xlu1 %v524_v13, 256  ;;  %v566_v28 = vrot.slane %v1229_v11, %v565_v26  ;;  %vm507_vm9 = vcmp.gt.f32.partialorder %v1229_v11, 0.0 }
  0x19   : > { %533 = vbcast.lane.b32.xlu1 %v531_v15, 256 }
  0x1a   : > { %1048 = vmatmul.mubr.msk.bf16.gmra.mrb[4].mxu0 %vm312_vm0, %v1237_v14 }
  0x1b   : > { %377 = vmatprep.mubr.bf16.mxu0 %v1154_v3 }
  0x1d   : > { %540 = vbcast.lane.b32.xlu1 %v538_v17, 256 }
  0x21   : > { %547 = vbcast.lane.b32.xlu1 %v545_v20, 256 }
  0x22   : > { %1049 = vmatmul.mubr.msk.bf16.gmra.mrb[8].mxu0 %vm312_vm0, %v1249_v19 }
  0x25   : > { %554 = vbcast.lane.b32.xlu1 %v552_v22, 256 }
  0x29   : > { %561 = vbcast.lane.b32.xlu1 %v559_v25, 256 }
  0x2a   : > { %519 = vbcast.lane.b32.xlu0 %v517_v27, 256 }
  0x2d   : > { %568 = vbcast.lane.b32.xlu1 %v566_v28, 256 }
  0x87   : > { %v527_v29 = vpop.permute.xlu1 %526 }
  0x8b   : > { %v534_v30 = vpop.permute.xlu1 %533 }
  0x8f   : > { %v1273_v31 = vpop.permute.xlu1 %540 }
  0x93   : > { %v1275_v32 = vpop.permute.xlu1 %547 }
  0x97   : > { %v1277_v33 = vpop.permute.xlu1 %554 }
  0x9b   : > { %v562_v37 = vpop.permute.xlu1 %561 }
  0x9f   : > { %v569_v53 = vpop.permute.xlu1 %568 }
  0xa1   : > { %v511_v34 = vpop.xlane.xlu0 %510 }
  0xa2   : > { %v512_v35 = vmax.f32 %v511_v34, 1.0 }
  0xa4   : > { %1108 = vrcp.f32 %v512_v35 }
  0xa5   : > { %v520_v38 = vpop.permute.xlu0 %519 }
  0xae   : > { %v1288_v58 = vpop.eup %1108 }
  0xaf   : > { %v627_v17 = vrot.slane %v1288_v58, 1  ;;  %v628_v20 = vrot.slane %v1288_v58, 2  ;;  %v632_v22 = vrot.slane %v1288_v58, 6 }
  0xe5   : > { %v359_v39 = vpop.f32.mrb[0].mxu0  ;;  %v389_v40 = vpop.f32.mrb[0].mxu1 }
  0xe6   : > { %v361_v41 = vpop.f32.mrb[1].mxu0  ;;  %v391_v42 = vpop.f32.mrb[1].mxu1  ;;  %v466_v34 = vadd.f32 %v1295_v2, %v359_v39 }
  0xe7   : > { %v467_v43 = vadd.f32 %v1282_v36, %v361_v41  ;;  %v485_v44 = vadd.f32 %v1282_v36, %v391_v42  ;;  %v363_v45 = vpop.f32.mrb[2].mxu0  ;;  %v393_v46 = vpop.f32.mrb[2].mxu1 }
  0xe8   : > { %v365_v47 = vpop.f32.mrb[3].mxu0  ;;  %v395_v48 = vpop.f32.mrb[3].mxu1 }
  0xe9   : > { %v498_v49 = vmax.f32 %v467_v43, 0.0  ;;  %v504_v50 = vmax.f32 %v485_v44, 0.0  ;;  %v470_v51 = vadd.f32 %v1282_v36, %v365_v47  ;;  %v488_v52 = vadd.f32 %v1282_v36, %v395_v48 }
  0xea   : > { %v484_v47 = vadd.f32 %v1295_v2, %v389_v40  ;;  %v469_v48 = vadd.f32 %v1295_v2, %v363_v45 }
  0xeb   : > { %v576_v54 = vmul.f32 %v562_v37, %v504_v50  ;;  %v499_v55 = vmax.f32 %v470_v51, 0.0  ;;  %v505_v56 = vmax.f32 %v488_v52, 0.0  ;;  %v570_v57 = vmul.f32 %v520_v38, %v498_v49 }
  0xec   : > { %v633_v38 = vrot.slane %v1288_v58, 7 }
  0xed   : > { %v614_v59 = vrot.slane %v576_v54, 4  ;;  %v571_v60 = vmul.f32 %v527_v29, %v499_v55  ;;  %v578_v61 = vrot.slane %v570_v57, 4  ;;  %v577_v62 = vmul.f32 %v569_v53, %v505_v56  ;;  %v1290_v63 = vpop.f32.mrb[4].mxu0 }
  0xee   : > { %v371_v0 = vpop.f32.mrb[5].mxu0  ;;  %v490_v55 = vmax.f32 %v466_v34, 0.0  ;;  %v487_v56 = vadd.f32 %v1295_v2, %v393_v46 }
  0xef   : > { %v615_v3 = vadd.f32 %v614_v59, %v576_v54  ;;  %v584_v4 = vrot.slane %v571_v60, 4  ;;  %v579_v5 = vadd.f32 %v578_v61, %v570_v57  ;;  %v620_v7 = vrot.slane %v577_v62, 4  ;;  %v1297_v12 = vpop.f32.mrb[6].mxu0 }
  0xf0   : > { %v473_v13 = vadd.f32 %v1282_v36, %v371_v0  ;;  %v375_v15 = vpop.f32.mrb[7].mxu0  ;;  %v497_v34 = vmax.f32 %v487_v56, 0.0  ;;  %v472_v56 = vadd.f32 %v1295_v2, %v1290_v63 }
  0xf1   : > { %v616_v25 = vrot.slane %v615_v3, 2  ;;  %v585_v27 = vadd.f32 %v584_v4, %v571_v60  ;;  %v580_v28 = vrot.slane %v579_v5, 2  ;;  %v621_v29 = vadd.f32 %v620_v7, %v577_v62 }
  0xf2   : > { %v500_v35 = vmax.f32 %v473_v13, 0.0  ;;  %v476_v37 = vadd.f32 %v1282_v36, %v375_v15  ;;  %v491_v13 = vmax.f32 %v469_v48, 0.0 }
  0xf3   : > { %v617_v41 = vadd.f32 %v616_v25, %v615_v3  ;;  %v586_v42 = vrot.slane %v585_v27, 2  ;;  %v581_v43 = vadd.f32 %v580_v28, %v579_v5  ;;  %v622_v44 = vrot.slane %v621_v29, 2 }
  0xf4   : > { %v572_v49 = vmul.f32 %v534_v30, %v500_v35  ;;  %v501_v50 = vmax.f32 %v476_v37, 0.0  ;;  %v496_v30 = vmax.f32 %v484_v47, 0.0 }
  0xf5   : > { %v618_v51 = vrot.slane %v617_v41, 1  ;;  %v587_v52 = vadd.f32 %v586_v42, %v585_v27  ;;  %v582_v53 = vrot.slane %v581_v43, 1  ;;  %v623_v54 = vadd.f32 %v622_v44, %v621_v29  ;;  %v1308_v39 = vpop.f32.mrb[8].mxu0 }
  0xf6   : > { %v590_v57 = vrot.slane %v572_v49, 4  ;;  %v573_v59 = vmul.f32 %v1273_v31, %v501_v50  ;;  %v381_v60 = vpop.f32.mrb[9].mxu0 }
  0xf7   : > { %v619_v61 = vadd.f32 %v618_v51, %v617_v41  ;;  %v588_v62 = vrot.slane %v587_v52, 1  ;;  %v583_v40 = vadd.f32 %v582_v53, %v581_v43  ;;  %v624_v0 = vrot.slane %v623_v54, 1  ;;  %v1312_v45 = vpop.f32.mrb[10].mxu0 }
  0xf8   : > { %v591_v3 = vadd.f32 %v590_v57, %v572_v49  ;;  %v596_v4 = vrot.slane %v573_v59, 4  ;;  %v479_v5 = vadd.f32 %v1282_v36, %v381_v60  ;;  %v385_v7 = vpop.f32.mrb[11].mxu0 }
  0xf9   : > { %v625_v15 = vadd.f32 %v624_v0, %v623_v54  ;;  %v482_v46 = vadd.f32 %v1282_v36, %v385_v7  ;;  %v642_v25 = vmul.f32 %v1288_v58, %v583_v40  ;;  %v589_v29 = vadd.f32 %v588_v62, %v587_v52 }
  0xfa   : > { %v592_v31 = vrot.slane %v591_v3, 2  ;;  %v597_v27 = vadd.f32 %v596_v4, %v573_v59  ;;  %v502_v28 = vmax.f32 %v479_v5, 0.0  ;;  %v648_v41 = vmul.f32 %v632_v22, %v619_v61 }
  0xfb   : > { %v503_v35 = vmax.f32 %v482_v46, 0.0  ;;  %v653_v37 = vrot.slane %v642_v25, %v1262_v24  ;;  %v643_v47 = vmul.f32 %v627_v17, %v589_v29  ;;  %v649_v50 = vmul.f32 %v633_v38, %v625_v15 }
  0xfc   : > { %v593_v42 = vadd.f32 %v592_v31, %v591_v3  ;;  %v598_v43 = vrot.slane %v597_v27, 2  ;;  %v574_v44 = vmul.f32 %v1275_v32, %v502_v28  ;;  %v677_v36 = vrot.slane %v648_v41, %v1262_v24 }
  0xfd   : > { %v575_v48 = vmul.f32 %v1277_v33, %v503_v35  ;;  %v682_v49 = vmul.f32 %v653_v37, %v490_v55  ;;  %v657_v52 = vrot.slane %v643_v47, %v1262_v24  ;;  %v681_v32 = vrot.slane %v649_v50, %v1262_v24 }
  0xfe   : > { %v594_v51 = vrot.slane %v593_v42, 1  ;;  %v599_v53 = vadd.f32 %v598_v43, %v597_v27  ;;  %v602_v54 = vrot.slane %v574_v44, 4  ;;  %v688_v57 = vmul.f32 %v677_v36, %v496_v30 }
  0xff   : > { %v608_v22 = vrot.slane %v575_v48, 4  ;;  %690 = vadd.xlane.f32.xlu0 %v682_v49  ;;  %v683_v33 = vmul.f32 %v657_v52, %v491_v13  ;;  %v629_v38 = vrot.slane %v1288_v58, 3  ;;  %v689_v61 = vmul.f32 %v681_v32, %v497_v34 }
 0x100   : > { %v600_v17 = vrot.slane %v599_v53, 1  ;;  %v603_v59 = vadd.f32 %v602_v54, %v574_v44  ;;  %v595_v55 = vadd.f32 %v594_v51, %v593_v42  ;;  %v475_v62 = vadd.f32 %v1295_v2, %v1297_v12 }
 0x101   : > { %v609_v60 = vadd.f32 %v608_v22, %v575_v48  ;;  %692 = vadd.xlane.f32.xlu1 %v683_v33  ;;  %v492_v3 = vmax.f32 %v472_v56, 0.0  ;;  %v478_v12 = vadd.f32 %v1295_v2, %v1308_v39  ;;  %v630_v29 = vrot.slane %v1288_v58, 4 }
 0x102   : > { %v604_v40 = vrot.slane %v603_v59, 2  ;;  %v644_v63 = vmul.f32 %v628_v20, %v595_v55  ;;  %v601_v0 = vadd.f32 %v600_v17, %v599_v53  ;;  %v493_v15 = vmax.f32 %v475_v62, 0.0 }
 0x103   : > { %v610_v30 = vrot.slane %v609_v60, 2  ;;  %v481_v34 = vadd.f32 %v1295_v2, %v1312_v45  ;;  %v631_v37 = vrot.slane %v1288_v58, 5  ;;  %v494_v43 = vmax.f32 %v478_v12, 0.0 }
 0x104   : > { %v605_v4 = vadd.f32 %v604_v40, %v603_v59  ;;  %v661_v5 = vrot.slane %v644_v63, %v1262_v24  ;;  %v645_v7 = vmul.f32 %v629_v38, %v601_v0  ;;  %v715_v2 = vand.u32 127, %v514_v1 }
 0x105   : > { %v611_v13 = vadd.f32 %v610_v30, %v609_v60  ;;  %v495_v47 = vmax.f32 %v481_v34, 0.0 }
 0x106   : > { %v606_v46 = vrot.slane %v605_v4, 1  ;;  %v684_v25 = vmul.f32 %v661_v5, %v492_v3  ;;  %v665_v31 = vrot.slane %v645_v7, %v1262_v24  ;;  %v718_v50 = vsub.s32 %v715_v2, %v1211_v6  ;;  %v1107_v5 = vld [vmem:[%s1412_s2 + $0x20] ss:$12 sps:$4 sm:$0xff]  }
 0x107   : > { %v612_v27 = vrot.slane %v611_v13, 1 }
 0x108   : > { %694 = vadd.xlane.f32.xlu0 %v684_v25  ;;  %v685_v28 = vmul.f32 %v665_v31, %v493_v15  ;;  %v607_v20 = vadd.f32 %v606_v46, %v605_v4  ;;  %v1106_v4 = vld [vmem:[%s1412_s2 + $0x8] ss:$12 sps:$4 sm:$0xff]  }
 0x109   : > { %v613_v35 = vadd.f32 %v612_v27, %v611_v13  ;;  %1071 = vmatprep.subr.bf16.mxu1 %v1106_v4 }
 0x10a   : > { %v646_v41 = vmul.f32 %v630_v29, %v607_v20  ;;  %1072 = vmatpush3.bf16.msra.mxu1 %v1106_v4 }
 0x10b   : > { %v647_v42 = vmul.f32 %v631_v37, %v613_v35  ;;  %1073 = vmatprep.subr.bf16.mxu1 %v1107_v5 }
 0x10c   : > { %696 = vadd.xlane.f32.xlu0 %v685_v28  ;;  %v669_v44 = vrot.slane %v646_v41, %v1262_v24 }
 0x10d   : > { %v673_v39 = vrot.slane %v647_v42, %v1262_v24 }
 0x10e   : > { %v686_v48 = vmul.f32 %v669_v44, %v494_v43  ;;  %1074 = vmatpush3.bf16.msra.mxu1 %v1107_v5 }
 0x10f   : > { %v687_v49 = vmul.f32 %v673_v39, %v495_v47 }
 0x110   : > { %698 = vadd.xlane.f32.xlu1 %v686_v48 }
 0x111   : > { %700 = vadd.xlane.f32.xlu0 %v687_v49  ;;  %1076 = vmatmul.mubr.msk.bf16.vlgmr.msra.gmra.mrb[4].mxu1 %vm312_vm0, %v1237_v14 }
 0x112   : > { %1079 = vmatprep.mubr.msk.bf16.mxu1 %vm312_vm0, %v1249_v19 }
 0x114   : > { %702 = vadd.xlane.f32.xlu1 %v688_v57 }
 0x115   : > { %704 = vadd.xlane.f32.xlu0 %v689_v61 }
 0x119   : > { %1080 = vmatmul.mubr.msk.bf16.gmra.mrb[8].mxu1 %vm312_vm0, %v1217_v8 }
 0x18c   : > { %v691_v36 = vpop.xlane.xlu0 %690 }
 0x18d   : > { %v719_v52 = vrot.slane %v691_v36, %v718_v50 }
 0x18e   : > { %v693_v58 = vpop.xlane.xlu1 %692 }
 0x18f   : > { %v723_v51 = vrot.slane %v693_v58, %v718_v50 }
 0x191   : > { %v749_v22 = vsel %vm748_vm2, %v723_v51, %v719_v52 }
 0x195   : > { %v695_v45 = vpop.xlane.xlu0 %694 }
 0x196   : > { %v727_v54 = vrot.slane %v695_v45, %v718_v50 }
 0x198   : > { %v751_v32 = vsel %vm750_vm3, %v727_v54, %v749_v22 }
 0x199   : > { %v697_v53 = vpop.xlane.xlu0 %696 }
 0x19a   : > { %v731_v56 = vrot.slane %v697_v53, %v718_v50 }
 0x19c   : > { %v753_v59 = vsel %vm752_vm4, %v731_v56, %v751_v32 }
 0x19d   : > { %v699_v57 = vpop.xlane.xlu1 %698 }
 0x19e   : > { %v735_v17 = vrot.slane %v699_v57, %v718_v50  ;;  %v701_v1 = vpop.xlane.xlu0 %700 }
 0x19f   : > { %v739_v33 = vrot.slane %v701_v1, %v718_v50 }
 0x1a0   : > { %v755_v55 = vsel %vm754_vm5, %v735_v17, %v753_v59 }
 0x1a1   : > { %v757_v60 = vsel %vm756_vm6, %v739_v33, %v755_v55  ;;  %v703_v38 = vpop.xlane.xlu1 %702 }
 0x1a2   : > { %v743_v61 = vrot.slane %v703_v38, %v718_v50  ;;  %v705_v62 = vpop.xlane.xlu0 %704 }
 0x1a3   : > { %v747_v40 = vrot.slane %v705_v62, %v718_v50 }
 0x1a4   : > { %v759_v63 = vsel %vm758_vm7, %v743_v61, %v757_v60 }
 0x1a5   : > { %v761_v0 = vsel %vm760_vm8, %v747_v40, %v759_v63 }
 0x1a6   : > { %v763_v30 = vsel %vm507_vm9, %v761_v0, -1e+09 }
 0x1a7   : > { %v764_v3 = vsel %vm508_vm1, %v763_v30, -inf }
 0x1a8   : > { %765 = vmax.xlane.f32.xlu1 %v764_v3 }
 0x1e4   : > { %v1077_v25 = vpop.f32.mrb[4].mxu1 }
 0x1e5   : > { %v432_v31 = vpop.f32.mrb[5].mxu1 }
 0x1e6   : > { %v1078_v27 = vpop.f32.mrb[6].mxu1 }
 0x1e7   : > { %v435_v12 = vpop.f32.mrb[7].mxu1 }
 0x1ec   : > { %v1081_v14 = vpop.f32.mrb[8].mxu1 }
 0x1ed   : > { %v448_v20 = vpop.f32.mrb[9].mxu1 }
 0x1ee   : > { %v1364_v34 = vpop.f32.mrb[10].mxu1 }
 0x1ef   : > { %v451_v8 = vpop.f32.mrb[11].mxu1 }
 0x235   : > { %v766_v11 = vpop.xlane.xlu1 %765 }
 0x236   : > { %v767_v7 = vsub.f32 %v763_v30, %v766_v11  ;;  %v1384_v30 = vstv %s887_s24 }
 0x238   : > { %v768_v13 = vmul.f32 1.442695, %v767_v7 }
 0x23a   : > { %1110 = vpow2.f32 %v768_v13 }
 0x244   : > { %v1111_v15 = vpop.eup %1110 }
 0x245   : > { %v770_v46 = vsel %vm508_vm1, %v1111_v15, 0.0 }
 0x246   : > { %771 = vadd.xlane.f32.xlu0 %v770_v46 }
 0x2d3   : > { %v772_v28 = vpop.xlane.xlu0 %771 }
 0x2d4   : > { %1112 = vrcp.f32 %v772_v28 }
 0x2de   : > { %v1113_v19 = vpop.eup %1112 }
 0x2df   : > { %v774_v29 = vmul.f32 %v1113_v19, %v1111_v15 }
 0x2e1   : > { %v785_v35 = vrot.slane %v774_v29, %v523_v9  ;;  %v778_v37 = vrot.slane %v774_v29, %v1262_v24  ;;  %v806_v41 = vrot.slane %v774_v29, %v544_v18  ;;  %v792_v42 = vrot.slane %v774_v29, %v530_v10  ;;  %v465_v10 = vld [vmem:[%s1413_s3 + $0x10] sm:$0xff] }
 0x2e2   : > { %v820_v43 = vrot.slane %v774_v29, %v558_v23  ;;  %v799_v44 = vrot.slane %v774_v29, %v537_v16  ;;  %v813_v9 = vrot.slane %v774_v29, %v551_v21  ;;  %v827_v18 = vrot.slane %v774_v29, %v565_v26 }
 0x2e3   : > { %787 = vbcast.lane.b32.xlu0 %v785_v35, 256  ;;  %780 = vbcast.lane.b32.xlu1 %v778_v37, 256  ;;  %v468_v24 = vadd.f32 %v465_v10, %v432_v31  ;;  %v471_v47 = vadd.f32 %v465_v10, %v435_v12  ;;  %v474_v48 = vadd.f32 %v1077_v25, %v465_v10 }
 0x2e4   : > { %v480_v36 = vadd.f32 %v465_v10, %v448_v20  ;;  %v486_v53 = vadd.f32 %v1081_v14, %v465_v10  ;;  %v477_v57 = vadd.f32 %v1078_v27, %v465_v10  ;;  %v483_v61 = vadd.f32 %v465_v10, %v451_v8 }
 0x2e5   : > { %v489_v20 = vadd.f32 %v1364_v34, %v465_v10 }
 0x2e7   : > { %808 = vbcast.lane.b32.xlu0 %v806_v41, 256  ;;  %794 = vbcast.lane.b32.xlu1 %v792_v42, 256 }
 0x2eb   : > { %822 = vbcast.lane.b32.xlu0 %v820_v43, 256  ;;  %801 = vbcast.lane.b32.xlu1 %v799_v44, 256 }
 0x2ef   : > { %815 = vbcast.lane.b32.xlu1 %v813_v9, 256 }
 0x2f3   : > { %829 = vbcast.lane.b32.xlu1 %v827_v18, 256 }
 0x355   : > { %v788_v23 = vpop.permute.xlu0 %787  ;;  %v781_v39 = vpop.permute.xlu1 %780 }
 0x356   : > { %v832_v16 = vmul.f32 %v788_v23, %v471_v47  ;;  %v831_v49 = vmul.f32 %v781_v39, %v468_v24 }
 0x358   : > { %v845_v2 = vrot.slane %v832_v16, 4  ;;  %v839_v45 = vrot.slane %v831_v49, 4 }
 0x359   : > { %v809_v21 = vpop.permute.xlu0 %808  ;;  %v795_v58 = vpop.permute.xlu1 %794 }
 0x35a   : > { %v846_v6 = vadd.f32 %v845_v2, %v832_v16  ;;  %v840_v26 = vadd.f32 %v839_v45, %v831_v49  ;;  %v835_v50 = vmul.f32 %v809_v21, %v480_v36  ;;  %v833_v51 = vmul.f32 %v795_v58, %v474_v48 }
 0x35c   : > { %v847_v54 = vrot.slane %v846_v6, 2  ;;  %v841_v52 = vrot.slane %v840_v26, 2  ;;  %v863_v56 = vrot.slane %v835_v50, 4  ;;  %v851_v22 = vrot.slane %v833_v51, 4 }
 0x35d   : > { %v823_v32 = vpop.permute.xlu0 %822  ;;  %v802_v17 = vpop.permute.xlu1 %801 }
 0x35e   : > { %v848_v1 = vadd.f32 %v847_v54, %v846_v6  ;;  %v842_v59 = vadd.f32 %v841_v52, %v840_v26  ;;  %v864_v33 = vadd.f32 %v863_v56, %v835_v50  ;;  %v852_v55 = vadd.f32 %v851_v22, %v833_v51 }
 0x35f   : > { %v837_v60 = vmul.f32 %v823_v32, %v486_v53  ;;  %v834_v38 = vmul.f32 %v802_v17, %v477_v57 }
 0x360   : > { %v849_v62 = vrot.slane %v848_v1, 1  ;;  %v843_v40 = vrot.slane %v842_v59, 1  ;;  %v865_v63 = vrot.slane %v864_v33, 2  ;;  %v853_v0 = vrot.slane %v852_v55, 2 }
 0x361   : > { %v875_v3 = vrot.slane %v837_v60, 4  ;;  %v857_v4 = vrot.slane %v834_v38, 4  ;;  %v816_v5 = vpop.permute.xlu1 %815 }
 0x362   : > { %v850_v11 = vadd.f32 %v849_v62, %v848_v1  ;;  %v844_v7 = vadd.f32 %v843_v40, %v842_v59  ;;  %v866_v13 = vadd.f32 %v865_v63, %v864_v33  ;;  %v854_v15 = vadd.f32 %v853_v0, %v852_v55 }
 0x363   : > { %v876_v46 = vadd.f32 %v875_v3, %v837_v60  ;;  %v858_v25 = vadd.f32 %v857_v4, %v834_v38  ;;  %v836_v31 = vmul.f32 %v816_v5, %v483_v61 }
 0x364   : > { %v890_v27 = vadd.f32 %v1384_v30, %v850_v11  ;;  %v889_v12 = vadd.f32 %v1384_v30, %v844_v7  ;;  %v867_v28 = vrot.slane %v866_v13, 1  ;;  %v855_v14 = vrot.slane %v854_v15, 1 }
 0x365   : > { %v877_v19 = vrot.slane %v876_v46, 2  ;;  %v859_v29 = vrot.slane %v858_v25, 2  ;;  %v869_v8 = vrot.slane %v836_v31, 4  ;;  %v830_v35 = vpop.permute.xlu1 %829 }
 0x366   : > { %v1056_v37 = vmul.f32 -1.442695, %v890_v27  ;;  %v1055_v41 = vmul.f32 -1.442695, %v889_v12  ;;  %v868_v42 = vadd.f32 %v867_v28, %v866_v13  ;;  %v856_v43 = vadd.f32 %v855_v14, %v854_v15 }
 0x367   : > { %v878_v44 = vadd.f32 %v877_v19, %v876_v46  ;;  %v860_v9 = vadd.f32 %v859_v29, %v858_v25  ;;  %v870_v18 = vadd.f32 %v869_v8, %v836_v31  ;;  %v838_v24 = vmul.f32 %v830_v35, %v489_v20 }
 0x368   : > { %1114 = vpow2.f32 %v1056_v37  ;;  %v893_v47 = vadd.f32 %v1384_v30, %v868_v42  ;;  %v891_v23 = vadd.f32 %v1384_v30, %v856_v43 }
 0x369   : > { %1116 = vpow2.f32 %v1055_v41  ;;  %v879_v39 = vrot.slane %v878_v44, 1  ;;  %v861_v34 = vrot.slane %v860_v9, 1  ;;  %v871_v10 = vrot.slane %v870_v18, 2 }
 0x36a   : > { %v1057_v48 = vmul.f32 -1.442695, %v891_v23  ;;  %v881_v16 = vrot.slane %v838_v24, 4  ;;  %v1059_v49 = vmul.f32 -1.442695, %v893_v47 }
 0x36b   : > { %v880_v36 = vadd.f32 %v879_v39, %v878_v44  ;;  %v862_v2 = vadd.f32 %v861_v34, %v860_v9  ;;  %v872_v45 = vadd.f32 %v871_v10, %v870_v18 }
 0x36c   : > { %v882_v21 = vadd.f32 %v881_v16, %v838_v24  ;;  %1118 = vpow2.f32 %v1057_v48 }
 0x36d   : > { %v895_v58 = vadd.f32 %v1384_v30, %v880_v36  ;;  %v892_v6 = vadd.f32 %v1384_v30, %v862_v2  ;;  %v873_v26 = vrot.slane %v872_v45, 1  ;;  %1120 = vpow2.f32 %v1059_v49 }
 0x36e   : > { %v883_v50 = vrot.slane %v882_v21, 2 }
 0x36f   : > { %v1058_v51 = vmul.f32 -1.442695, %v892_v6  ;;  %v874_v53 = vadd.f32 %v873_v26, %v872_v45  ;;  %v1061_v54 = vmul.f32 -1.442695, %v895_v58 }
 0x370   : > { %v884_v52 = vadd.f32 %v883_v50, %v882_v21 }
 0x371   : > { %v894_v56 = vadd.f32 %v1384_v30, %v874_v53  ;;  %1122 = vpow2.f32 %v1058_v51 }
 0x372   : > { %v1115_v22 = vpop.eup %1114  ;;  %v885_v57 = vrot.slane %v884_v52, 1  ;;  %1124 = vpow2.f32 %v1061_v54 }
 0x373   : > { %v1117_v32 = vpop.eup %1116  ;;  %v922_v17 = vadd.f32 1.0, %v1115_v22  ;;  %v1060_v1 = vmul.f32 -1.442695, %v894_v56 }
 0x374   : > { %v921_v59 = vadd.f32 1.0, %v1117_v32  ;;  %v886_v33 = vadd.f32 %v885_v57, %v884_v52 }
 0x375   : > { %1126 = vrcp.f32 %v922_v17 }
 0x376   : > { %1128 = vrcp.f32 %v921_v59  ;;  %v896_v55 = vadd.f32 %v1384_v30, %v886_v33  ;;  %v1119_v60 = vpop.eup %1118 }
 0x377   : > { %1130 = vpow2.f32 %v1060_v1  ;;  %v923_v38 = vadd.f32 1.0, %v1119_v60  ;;  %v1121_v62 = vpop.eup %1120 }
 0x378   : > { %v1062_v61 = vmul.f32 -1.442695, %v896_v55  ;;  %v925_v63 = vadd.f32 1.0, %v1121_v62 }
 0x379   : > { %1132 = vrcp.f32 %v923_v38 }
 0x37a   : > { %1134 = vpow2.f32 %v1062_v61 }
 0x37b   : > { %v1123_v40 = vpop.eup %1122 }
 0x37c   : > { %v924_v0 = vadd.f32 1.0, %v1123_v40  ;;  %v1125_v3 = vpop.eup %1124 }
 0x37d   : > { %v927_v13 = vadd.f32 1.0, %v1125_v3 }
 0x37e   : > { %1136 = vrcp.f32 %v924_v0 }
 0x37f   : > { %v1127_v4 = vpop.eup %1126  ;;  %1138 = vrcp.f32 %v925_v63 }
 0x380   : > { %v1129_v5 = vpop.eup %1128 }
 0x381   : > { %v1131_v11 = vpop.eup %1130  ;;  %v953_v7 = vsel %vm748_vm2, %v1127_v4, %v1129_v5 }
 0x382   : > { %v926_v30 = vadd.f32 1.0, %v1131_v11 }
 0x383   : > { %v1133_v15 = vpop.eup %1132 }
 0x384   : > { %1140 = vrcp.f32 %v926_v30  ;;  %v1135_v46 = vpop.eup %1134  ;;  %v954_v25 = vsel %vm750_vm3, %v1133_v15, %v953_v7 }
 0x385   : > { %1142 = vrcp.f32 %v927_v13  ;;  %v928_v31 = vadd.f32 1.0, %v1135_v46 }
 0x387   : > { %1144 = vrcp.f32 %v928_v31 }
 0x388   : > { %v1137_v27 = vpop.eup %1136 }
 0x389   : > { %v1139_v12 = vpop.eup %1138  ;;  %v955_v28 = vsel %vm752_vm4, %v1137_v27, %v954_v25 }
 0x38a   : > { %v956_v14 = vsel %vm754_vm5, %v1139_v12, %v955_v28 }
 0x38e   : > { %v1141_v20 = vpop.eup %1140 }
 0x38f   : > { %v1143_v19 = vpop.eup %1142  ;;  %v957_v29 = vsel %vm756_vm6, %v1141_v20, %v956_v14 }
 0x390   : > { %v958_v8 = vsel %vm758_vm7, %v1143_v19, %v957_v29 }
 0x391   : > { %v1145_v35 = vpop.eup %1144 }
 0x392   : > { %v959_v37 = vsel %vm760_vm8, %v1145_v35, %v958_v8 }
 0x393   : > { %962 = vst.msk [vmem:[%s242_s27] sm:$0xff] %vm961_vm10, %v959_v37 }
 0x394 PF: > { %s16_s20 = sadd.s32 1, %s1152_s20  }
 0x395   : > { %p13_p5 = scmp.ge.s32.totalorder %s16_s20, 4  }
 0x397   :  { %15 = sbr.rel (!%p13_p5) target bundleno = 2 (0x2), region = 73 }

</bundles_post_ra>
